<compile_context>
chip_gen: v5e
topology: v5e:2x2
jax: 0.10.0
libtpu: 0.0.40
codegen_flags: <defaults>
</compile_context>

<pallas_src>
import jax
import jax.numpy as jnp
from jax.experimental import pallas as pl
from jax.experimental.pallas import tpu as pltpu


def task_kernel(x_ref, w_ref, b_ref, o_ref, acc_ref):
    """One (batch-tile, k-tile) step of softmax(x @ W + b, axis=1)."""
    k = pl.program_id(1)

    @pl.when(k == 0)
    def _init():
        # Fold the bias into the accumulator init.  Padded feature columns carry a
        # -1e30 bias so they vanish under the softmax epilogue (f32 accumulation).
        acc_ref[...] = jnp.zeros_like(acc_ref) + b_ref[...]

    # Native-dtype operands straight into the MXU; accumulate in f32.
    acc_ref[...] += jnp.dot(x_ref[...], w_ref[...],
                            preferred_element_type=jnp.float32)

    @pl.when(k == pl.num_programs(1) - 1)
    def _epilogue():
        logits = acc_ref[...]
        m = jnp.max(logits, axis=-1, keepdims=True)
        e = jnp.exp(logits - m)
        s = jnp.sum(e, axis=-1, keepdims=True)
        # Exact division for strict parity with torch.nn.Softmax (rows sum to 1);
        # the EUP approx-reciprocal introduced ~1e-3 normalization error.
        o_ref[...] = (e / s).astype(o_ref.dtype)


def _cdiv(a, b):
    return -(-a // b)


def _round_up(n, m):
    return ((n + m - 1) // m) * m


def _vmem_budget_bytes():
    """Per-generation scoped-VMEM limit and tile budget (with headroom)."""
    try:
        cap = pltpu.get_tpu_info().vmem_capacity_bytes
    except Exception:
        cap = 128 * 1024 * 1024          # assume a 128 MiB part if query fails
    limit = min(int(cap * 0.75), 100 * 1024 * 1024)   # 48 MiB on v7x, 96 MiB on v5e/v6e
    budget = int(limit * 0.8)
    return budget, limit


def task_forward(x, w, b):
    """x: (B, Din), w: (Din, Dout), b: (Dout,) -> softmax(x @ w + b, axis=1)."""
    B, Din = x.shape
    Dout = w.shape[1]
    out_dtype = x.dtype

    budget, vmem_limit = _vmem_budget_bytes()

    # ---- lane-dense output: pad feature dim to a multiple of 128 --------------------
    Dout_p = _round_up(Dout, 128)

    x_item = jnp.dtype(x.dtype).itemsize
    w_item = jnp.dtype(w.dtype).itemsize
    o_item = jnp.dtype(out_dtype).itemsize

    # ---- K (reduction) tiling --------------------------------------------------------
    # Pallas double-buffers every input spec (even with a constant index_map), so the
    # resident weight/bias really cost 2x their size.
    full_w_bytes = 2 * (Din * Dout_p * w_item + Dout_p * 4)
    if full_w_bytes <= budget // 2:
        tk = Din                       # whole reduction in a single K step
        Din_p = Din
    else:
        tk = max(256, ((budget // 2) // (2 * Dout_p * w_item)) // 256 * 256)
        tk = min(tk, _round_up(Din, 256))
        Din_p = _round_up(Din, tk)
    w_bytes = 2 * (tk * Dout_p * w_item + Dout_p * 4)

    # ---- batch tile from the remaining VMEM budget ------------------------------------
    # 2x for double-buffered x / out tiles, plus the f32 accumulator scratch and the
    # f32 softmax intermediates (logits, e) that live alongside it.
    per_row = 2 * tk * x_item + 2 * Dout_p * o_item + 3 * Dout_p * 4
    tm_cap = max(8, (budget - w_bytes) // max(per_row, 1))
    tm_cap = min(tm_cap, 1024)

    sub_align = max(8, 32 // x_item)                  # 8 f32, 16 bf16, 32 int8/fp8
    align = 256 if (B >= 512 and tm_cap >= 256) else sub_align

    # Minimize batch padding: pick the tile count first, then the tile size.
    ntiles = _cdiv(B, tm_cap)
    tm = _round_up(_cdiv(B, ntiles), align)
    tm = min(tm, max(align, (tm_cap // align) * align))
    tm = max(tm, sub_align)

    # Give v7x's two TensorCores at least two batch tiles to split when possible.
    if _cdiv(B, tm) < 2 and tm >= 2 * sub_align:
        tm = _round_up(_cdiv(tm, 2), sub_align)

    B_p = _round_up(B, tm)

    # ---- host-side padding (fused by XLA around the kernel) ---------------------------
    x_p = x
    if B_p != B or Din_p != Din:
        x_p = jnp.pad(x, ((0, B_p - B), (0, Din_p - Din)))
    w_p = w
    if Din_p != Din or Dout_p != Dout:
        w_p = jnp.pad(w, ((0, Din_p - Din), (0, Dout_p - Dout)))
    b_p = b.reshape(1, Dout).astype(jnp.float32)
    if Dout_p != Dout:
        # -1e30 on pad columns: exp(pad - max) underflows to 0 under f32 accumulation,
        # so padded lanes never perturb the softmax of the real columns.
        b_p = jnp.pad(b_p, ((0, 0), (0, Dout_p - Dout)), constant_values=-1e30)

    grid = (B_p // tm, Din_p // tk)

    cost = pl.CostEstimate(
        flops=2 * B_p * Din_p * Dout_p,
        transcendentals=B_p * Dout_p,
        bytes_accessed=(B_p * Din_p * x_item + Din_p * Dout_p * w_item
                        + Dout_p * 4 + B_p * Dout_p * o_item),
    )

    out = pl.pallas_call(
        task_kernel,
        out_shape=jax.ShapeDtypeStruct((B_p, Dout_p), out_dtype),
        grid_spec=pltpu.PrefetchScalarGridSpec(
            num_scalar_prefetch=0,
            grid=grid,
            in_specs=[
                pl.BlockSpec((tm, tk), lambda i, k: (i, k)),        # batch/K tiled x
                pl.BlockSpec((tk, Dout_p), lambda i, k: (k, 0)),    # K-tiled weight
                pl.BlockSpec((1, Dout_p), lambda i, k: (0, 0)),     # resident bias
            ],
            out_specs=pl.BlockSpec((tm, Dout_p), lambda i, k: (i, 0)),
            scratch_shapes=[pltpu.VMEM((tm, Dout_p), jnp.float32)],
        ),
        compiler_params=pltpu.CompilerParams(
            dimension_semantics=("parallel", "arbitrary"),
            vmem_limit_bytes=int(vmem_limit),
        ),
        cost_estimate=cost,
    )(x_p, w_p, b_p)

    return out[:B, :Dout]


if __name__ == "__main__":
    # Small shapes consistent with Task(input_dim, output_dim)
    batch, input_dim, output_dim = 8, 32, 16

    key = jax.random.PRNGKey(0)
    kx, kw, kb = jax.random.split(key, 3)

    x = jax.random.normal(kx, (batch, input_dim), dtype=jnp.float32)
    # PyTorch stores W as (out, in); we keep (in, out) so the kernel does x @ W.
    bound = 1.0 / (input_dim ** 0.5)
    w = jax.random.uniform(kw, (input_dim, output_dim), dtype=jnp.float32,
                           minval=-bound, maxval=bound)
    b = jax.random.uniform(kb, (output_dim,), dtype=jnp.float32,
                           minval=-bound, maxval=bound)

    out = task_forward(x, w, b)
    out = jax.block_until_ready(out)

    # Reference check (plain JAX).
    ref = jax.nn.softmax(x @ w + b, axis=1)
    assert out.shape == (batch, output_dim)
    assert jnp.allclose(out, ref, atol=2e-3, rtol=2e-3)
    # Rows sum to 1 (exact-division softmax).
    assert jnp.allclose(jnp.sum(out, axis=1), jnp.ones((batch,)), atol=2e-3)

    print("KERNEL_OK")
</pallas_src>

<mosaic_0001>
module attributes {stable_mosaic.version = 11 : i64} {
  func.func @task_kernel(%arg0: i32, %arg1: i32, %arg2: memref<8x32xf32, #tpu.memory_space<vmem>>, %arg3: memref<32x128xf32, #tpu.memory_space<vmem>>, %arg4: memref<1x128xf32, #tpu.memory_space<vmem>>, %arg5: memref<8x128xf32, #tpu.memory_space<vmem>>, %arg6: memref<8x128xf32, #tpu.memory_space<vmem>>) attributes {dimension_semantics = [#tpu.dimension_semantics<parallel>, #tpu.dimension_semantics<arbitrary>], iteration_bounds = array<i64: 1, 1>, scalar_prefetch = 0 : i64, scratch_operands = 1 : i64, tpu.core_type = #tpu.core_type<tc>, window_params = [{transform_indices = @transform_0, window_bounds = array<i64: 8, 32>}, {transform_indices = @transform_1, window_bounds = array<i64: 32, 128>}, {pipeline_mode = #tpu.pipeline_mode<synchronous>, transform_indices = @transform_2, window_bounds = array<i64: 1, 128>}, {transform_indices = @transform_3, window_bounds = array<i64: 8, 128>}]} {
    %c0_i32 = arith.constant 0 : i32
    %0 = arith.cmpi eq, %arg1, %c0_i32 : i32
    %1 = arith.extui %0 : i1 to i32
    %c0_i32_0 = arith.constant 0 : i32
    %2 = arith.cmpi ne, %1, %c0_i32_0 : i32
    scf.if %2 {
      %cst_10 = arith.constant 0.000000e+00 : f32
      %12 = vector.broadcast %cst_10 : f32 to vector<8x128xf32>
      %c0_11 = arith.constant 0 : index
      %c0_12 = arith.constant 0 : index
      %13 = vector.load %arg4[%c0_11, %c0_12] : memref<1x128xf32, #tpu.memory_space<vmem>>, vector<1x128xf32>
      %14 = vector.broadcast %13 : vector<1x128xf32> to vector<8x128xf32>
      %15 = arith.addf %12, %14 : vector<8x128xf32>
      %c0_13 = arith.constant 0 : index
      %c0_14 = arith.constant 0 : index
      %16 = vector.load %arg6[%c0_13, %c0_14] : memref<8x128xf32, #tpu.memory_space<vmem>>, vector<8x128xf32>
      tpu.vector_store %arg6[%c0_13, %c0_14], %15 {strides = array<i32>} : memref<8x128xf32, #tpu.memory_space<vmem>>, vector<8x128xf32>,
    } else {
    }
    %c0 = arith.constant 0 : index
    %c0_1 = arith.constant 0 : index
    %3 = vector.load %arg6[%c0, %c0_1] : memref<8x128xf32, #tpu.memory_space<vmem>>, vector<8x128xf32>
    %c0_2 = arith.constant 0 : index
    %c0_3 = arith.constant 0 : index
    %4 = vector.load %arg2[%c0_2, %c0_3] : memref<8x32xf32, #tpu.memory_space<vmem>>, vector<8x32xf32>
    %c0_4 = arith.constant 0 : index
    %c0_5 = arith.constant 0 : index
    %5 = vector.load %arg3[%c0_4, %c0_5] : memref<32x128xf32, #tpu.memory_space<vmem>>, vector<32x128xf32>
    %cst = arith.constant dense<0.000000e+00> : vector<8x128xf32>
    %6 = tpu.matmul %4, %5, %cst {dimension_numbers = #tpu.dot_dimension_numbers<[1], [0], [0], [1], [0, 0, 1, 1], [], []>} : vector<8x32xf32>, vector<32x128xf32>, vector<8x128xf32> -> vector<8x128xf32>
    %7 = arith.addf %3, %6 : vector<8x128xf32>
    %c0_6 = arith.constant 0 : index
    %c0_7 = arith.constant 0 : index
    %8 = vector.load %arg6[%c0_6, %c0_7] : memref<8x128xf32, #tpu.memory_space<vmem>>, vector<8x128xf32>
    tpu.vector_store %arg6[%c0_6, %c0_7], %7 {strides = array<i32>} : memref<8x128xf32, #tpu.memory_space<vmem>>, vector<8x128xf32>,
    %c0_i32_8 = arith.constant 0 : i32
    %9 = arith.cmpi eq, %arg1, %c0_i32_8 : i32
    %10 = arith.extui %9 : i1 to i32
    %c0_i32_9 = arith.constant 0 : i32
    %11 = arith.cmpi ne, %10, %c0_i32_9 : i32
    scf.if %11 {
      %c0_10 = arith.constant 0 : index
      %c0_11 = arith.constant 0 : index
      %12 = vector.load %arg6[%c0_10, %c0_11] : memref<8x128xf32, #tpu.memory_space<vmem>>, vector<8x128xf32>
      %cst_12 = arith.constant dense<0xFF800000> : vector<8xf32>
      %13 = vector.multi_reduction <maximumf>, %12, %cst_12 [1] : vector<8x128xf32> to vector<8xf32>
      %14 = vector.shape_cast %13 : vector<8xf32> to vector<8x1xf32>
      %15 = vector.broadcast %14 : vector<8x1xf32> to vector<8x128xf32>
      %16 = arith.subf %12, %15 : vector<8x128xf32>
      %17 = math.exp %16 : vector<8x128xf32>
      %cst_13 = arith.constant dense<0.000000e+00> : vector<8xf32>
      %18 = vector.multi_reduction <add>, %17, %cst_13 [1] : vector<8x128xf32> to vector<8xf32>
      %19 = vector.shape_cast %18 : vector<8xf32> to vector<8x1xf32>
      %20 = vector.broadcast %19 : vector<8x1xf32> to vector<8x128xf32>
      %21 = arith.divf %17, %20 : vector<8x128xf32>
      %c0_14 = arith.constant 0 : index
      %c0_15 = arith.constant 0 : index
      %22 = vector.load %arg5[%c0_14, %c0_15] : memref<8x128xf32, #tpu.memory_space<vmem>>, vector<8x128xf32>
      tpu.vector_store %arg5[%c0_14, %c0_15], %21 {strides = array<i32>} : memref<8x128xf32, #tpu.memory_space<vmem>>, vector<8x128xf32>,
    } else {
    }
    return
  }
  func.func @transform_0(%arg0: i32, %arg1: i32) -> (i32, i32) {
    %c0_i32 = arith.constant 0 : i32
    return %arg0, %arg1 : i32, i32
  }
  func.func @transform_1(%arg0: i32, %arg1: i32) -> (i32, i32) {
    %c0_i32 = arith.constant 0 : i32
    %c0_i32_0 = arith.constant 0 : i32
    return %arg1, %c0_i32 : i32, i32
  }
  func.func @transform_2(%arg0: i32, %arg1: i32) -> (i32, i32) {
    %c0_i32 = arith.constant 0 : i32
    %c0_i32_0 = arith.constant 0 : i32
    %c0_i32_1 = arith.constant 0 : i32
    return %c0_i32, %c0_i32_0 : i32, i32
  }
  func.func @transform_3(%arg0: i32, %arg1: i32) -> (i32, i32) {
    %c0_i32 = arith.constant 0 : i32
    %c0_i32_0 = arith.constant 0 : i32
    return %arg0, %c0_i32 : i32, i32
  }
}

</mosaic_0001>

<bundles_post_ra>
// kernel: tpu_custom_call.1
= control target key start
LH: loop header
LB: loop body
LE: loop exit
PB: predicated region body
PF: predicated region fallthrough
CT: control target
= control target key end

     0   :  { %8 = vsyncpa [#allocation4], 0  ;;  %s258_s0 = inlined_call_operand.hbm [shape: f32[8,32], index: 0, kind: input, shape index: {}]   ;;  %s259_s1 = inlined_call_operand.hbm [shape: f32[32,128], index: 1, kind: input, shape index: {}]   ;;  %s260_s2 = inlined_call_operand.vmem [shape: f32[1,128], index: 2, kind: input, shape index: {}]   ;;  %s261_s3 = inlined_call_operand.hbm [shape: f32[8,128], index: 3, kind: output, shape index: {}]  }
   0x1   :  { %9 = vsyncpa [#allocation7], 0 }
   0x2   :  { %10 = vsyncpa [#allocation5], 0  ;;  %s16_s14 = sshll.u32 %s258_s0, 4  ;;  %s221_s15 = smov [#allocation3]   ;;  %s17_s14 = int_to_ptr.hbm [resolvable:$true] %s16_s14 }
   0x3   :  { %s18_s16 = sshll.u32 %s221_s15, 4  ;;  %s26_s19 = sshll.u32 %s259_s1, 4  ;;  %s19_s16 = int_to_ptr.vmem [resolvable:$true] %s18_s16  ;;  %s27_s19 = int_to_ptr.hbm [resolvable:$true] %s26_s19 }
   0x4   :  { %21 = dma.hbm_to_vmem [thread:$0]  %s17_s14, 128, %s19_s16, [#allocation4]  }
   0x5   :  { %s222_s20 = smov [#allocation6]   ;;  %s223_s22 = smov 128  }
   0x6   :  { %s28_s21 = sshll.u32 %s222_s20, 4  ;;  %s224_s23 = smov 8   ;;  %s29_s21 = int_to_ptr.vmem [resolvable:$true] %s28_s21 }
   0x7   :  { %34 = dma.hbm_to_vmem [thread:$0]  %s27_s19, 512, %s29_s21, [#allocation7], %s223_s22, %s223_s22, %s224_s23  }
   0x8   :  { %215 = dma.done.wait [#allocation4], 128  }
   0x9   :  { %216 = vsyncadd [#allocation4], 4294967168 }
   0xa   :  { %217 = dma.done.wait [#allocation7], 512  }
   0xb   :  { %218 = vsyncadd [#allocation7], 4294966784  ;;  %v60_v0 = vld [vmem:[#allocation6 + $0x18] sm:$0xff]  ;;  %v59_v1 = vld [vmem:[#allocation6 + $0x10] sm:$0xff]  ;;  %vm61_vm0 = vcmask 261120   ;;  %s121_s27 = sshll.u32 %s261_s3, 4  ;;  %s122_s27 = int_to_ptr.hbm [resolvable:$true] %s121_s27 }
   0xc   :  { %77 = vmatpush.msra.mxu0 %v60_v0  ;;  %v58_v2 = vld [vmem:[#allocation6 + $0x8] sm:$0xff]  ;;  %v57_v3 = vld [vmem:[#allocation6] sm:$0xff]  ;;  %v56_v4 = vld [vmem:[#allocation3] sm:$0xff] }
   0xd   :  { %v138_v5 = vld [vmem:[%s260_s2] ss:$0 sm:$0xff]  ;;  %s225_s2 = smov [#allocation8]  }
   0xe   :  { %78 = vmatpush.msra.mxu0 %v59_v1  ;;  %s119_s24 = sshll.u32 %s225_s2, 4  ;;  %s120_s24 = int_to_ptr.vmem [resolvable:$true] %s119_s24 }
  0x10   :  { %79 = vmatpush.msra.mxu0 %v58_v2 }
  0x12   :  { %80 = vmatpush.msra.mxu0 %v57_v3 }
  0x13   :  { %132 = vmatmul.msk.f32.vlgmr.msra.gmra.mxu0 %vm61_vm0, %v56_v4 }
  0x90   :  { %v82_v6 = vpop.f32.mrf.mxu0 }
  0x91   :  { %v85_v7 = vadd.f32 %v138_v5, %v82_v6 }
  0x93   :  { %91 = vmax.xlane.f32.xlu0 %v85_v7 }
 0x106   :  { %v92_v8 = vpop.xlane.xlu0 %91 }
 0x107   :  { %v93_v9 = vsub.f32 %v85_v7, %v92_v8 }
 0x109   :  { %v94_v10 = vmul.f32 1.442695, %v93_v9 }
 0x10b   :  { %139 = vpow2.f32 %v94_v10 }
 0x111   :  { %v140_v11 = vpop.eup %139 }
 0x112   :  { %96 = vadd.xlane.f32.xlu0 %v140_v11 }
 0x185   :  { %v97_v12 = vpop.xlane.xlu0 %96 }
 0x186   :  { %141 = vrcp.f32 %v97_v12  ;;  %v109_v16 = vand.u32 2147483648, %v97_v12  ;;  %v107_v18 = vand.u32 2147483647, %v97_v12  ;;  %vm103_vm2 = vweird.f32 %v97_v12 }
 0x188   :  { %v110_v20 = vor.u32 1.1754944e-38, %v109_v16  ;;  %vm108_vm4 = vcmp.eq.f32.partialorder %v107_v18, 8.507059e+37 }
 0x18c   :  { %v142_v13 = vpop.eup %141 }
 0x18d   :  { %v99_v14 = vmul.f32 %v142_v13, %v97_v12  ;;  %vm104_vm1 = vweird.f32 %v142_v13 }
 0x18e   :  { %vm105_vm3 = vmor %vm103_vm2, %vm104_vm1 }
 0x18f   :  { %v100_v15 = vsub.f32 1.0, %v99_v14 }
 0x191   :  { %v101_v17 = vmul.f32 %v142_v13, %v100_v15 }
 0x193   :  { %v102_v19 = vadd.f32 %v142_v13, %v101_v17 }
 0x195   :  { %v106_v21 = vsel %vm105_vm3, %v142_v13, %v102_v19 }
 0x196   :  { %v111_v22 = vsel %vm108_vm4, %v110_v20, %v106_v21 }
 0x197   :  { %v112_v23 = vmul.f32 %v140_v11, %v111_v22 }
 0x199   :  { %113 = vst [vmem:[#allocation8] sm:$0xff] %v112_v23 }
 0x19a   :  { %124 = dma.vmem_to_hbm [thread:$0]  %s120_s24, 128, %s122_s27, [#allocation5]  }
 0x19b   :  { %219 = dma.done.wait [#allocation5], 128  }
 0x19c   :  { %220 = vsyncadd [#allocation5], 4294967168 }
 0x19d   :  { %129 = vsyncpa [#allocation4], 1 }
 0x19e   :  { %130 = vsyncpa [#allocation7], 1 }
 0x19f   :  { %131 = vsyncpa [#allocation5], 1 }

</bundles_post_ra>
